<compile_context>
chip_gen: v7x
topology: tpu7x:2x2x1
jax: 0.10.0
libtpu: 0.0.40
codegen_flags: <defaults>
</compile_context>

<pallas_src>
import functools

import jax
import jax.numpy as jnp
from jax.experimental import pallas as pl
from jax.experimental.pallas import tpu as pltpu

# Safe on every generation (v7x physical VMEM is 64 MiB; v5e scoped default is
# only 16 MiB, so passing this explicitly matters there).
_VMEM_LIMIT_BYTES = 32 * 1024 * 1024
_TARGET_BLOCK_BYTES = 6 * 1024 * 1024  # ~0.35us/step overhead amortized on v7x


def _interp_matrix(out_size: int, in_size: int) -> jnp.ndarray:
    """(out_size, in_size) bilinear interpolation matrix, align_corners=True."""
    if out_size > 1:
        src = jnp.arange(out_size, dtype=jnp.float32) * (
            (in_size - 1) / (out_size - 1)
        )
    else:
        src = jnp.zeros((out_size,), dtype=jnp.float32)
    i0 = jnp.clip(jnp.floor(src).astype(jnp.int32), 0, in_size - 1)
    i1 = jnp.clip(i0 + 1, 0, in_size - 1)
    frac = src - i0.astype(jnp.float32)
    return (
        jax.nn.one_hot(i0, in_size, dtype=jnp.float32) * (1.0 - frac)[:, None]
        + jax.nn.one_hot(i1, in_size, dtype=jnp.float32) * frac[:, None]
    )


# ---------------------------------------------------------------------------
# Kernel A: per-batch separable bilinear downsample of the mask, fused with the
# modulation factor:  scale = 1 + sign * degree * mask_downsample
# Runs once per batch element (grid=(N,)).
# ---------------------------------------------------------------------------
def _scale_kernel(mask_ref, ah_ref, awt_ref, scale_ref, *, degree, sign):
    # mask_ref: (H, W), ah_ref: (h, H), awt_ref: (W, w), scale_ref: (h, w)
    # TODO(synk): for very large masks (H*W*4B*2 > VMEM limit) tile the second
    # contraction over W with a VMEM accumulator instead of one full-mask block.
    mask = mask_ref[...].astype(jnp.float32)
    tmp = jnp.dot(ah_ref[...], mask, preferred_element_type=jnp.float32)      # (h, W)
    mask_ds = jnp.dot(tmp, awt_ref[...], preferred_element_type=jnp.float32)  # (h, w)
    scale_ref[...] = 1.0 + (sign * degree) * mask_ds


# ---------------------------------------------------------------------------
# Kernel B: lane-dense streaming modulation   out = x * scale
# x / out are pre-flattened to (N, CG, L); scale is (N, 1, L) in x.dtype.
# Steady state: one vmul per element.
# ---------------------------------------------------------------------------
def _modulate_kernel(x_ref, scale_ref, o_ref):
    # x_ref / o_ref: (tc, tl); scale_ref: (1, tl)
    o_ref[...] = x_ref[...] * scale_ref[...]


def _pick_channel_group(c: int, hw: int) -> int:
    """Smallest channel-group g (dividing C) making the lane dim a mult of 128."""
    if hw % 128 == 0:
        return 1
    for g in range(1, c + 1):
        if c % g == 0 and (g * hw) % 128 == 0:
            return g
    return 1  # fallback: masked partial stores (still correct)


def _pick_tiles(cg: int, L: int, itemsize: int,
                target_bytes: int = _TARGET_BLOCK_BYTES):
    """(channel_tile, lane_tile) giving ~target_bytes blocks.

    Channel tile rounded to the dtype's sublane granularity (8 f32 / 16 bf16 /
    32 int8) and preferring a divisor of CG; lane tiling kicks in when a single
    channel row is already bigger than the target (multiples of 128 lanes).
    """
    sub = max(8, 32 // itemsize)
    row_bytes = L * itemsize
    if sub * row_bytes > target_bytes and L > 128:
        # Even a minimal channel tile is too big: split the lane dim instead.
        tc = cg if cg <= sub else sub
        tl = max(128, (target_bytes // (tc * itemsize)) // 128 * 128)
        return tc, min(tl, L)
    tl = L
    tc = max(1, target_bytes // row_bytes)
    if tc >= cg:
        return cg, tl
    tc = max(sub, (tc // sub) * sub)
    while tc > sub and cg % tc:     # prefer a tile that divides CG (no ragged tile)
        tc -= sub
    return min(tc, cg), tl


def modify_block(x, mask, *, n_downsamples, mod, degree):
    assert mod in ("strengthen", "weaken"), "need correct mod name"
    n, c, h, w = x.shape
    mn, mc, H, W = mask.shape
    assert mn == n and mc == 1
    assert H // (2 ** n_downsamples) == h and W // (2 ** n_downsamples) == w

    ah = _interp_matrix(h, H)          # (h, H)
    awt = _interp_matrix(w, W).T       # (W, w)
    sign = 1.0 if mod == "strengthen" else -1.0
    hw = h * w

    # ---- Kernel A: (N, 1, H, W) mask -> (N, h, w) modulation factor --------
    scale = pl.pallas_call(
        functools.partial(_scale_kernel, degree=float(degree), sign=sign),
        out_shape=jax.ShapeDtypeStruct((n, h, w), jnp.float32),
        grid_spec=pltpu.PrefetchScalarGridSpec(
            num_scalar_prefetch=0,
            grid=(n,),
            in_specs=[
                pl.BlockSpec((pl.Squeezed(), pl.Squeezed(), H, W),
                             lambda i: (i, 0, 0, 0)),
                pl.BlockSpec((h, H), lambda i: (0, 0)),
                pl.BlockSpec((W, w), lambda i: (0, 0)),
            ],
            out_specs=pl.BlockSpec((pl.Squeezed(), h, w), lambda i: (i, 0, 0)),
        ),
        compiler_params=pltpu.CompilerParams(
            dimension_semantics=("parallel",),
            vmem_limit_bytes=_VMEM_LIMIT_BYTES,
        ),
    )(mask, ah, awt)

    # ---- lane-dense layouts --------------------------------------------------
    g = _pick_channel_group(c, hw)          # fold g channels into the lane dim
    cg = c // g
    L = g * hw
    x_flat = x.reshape(n, cg, L)            # contiguous reshape: no data movement
    # scale is channel-independent -> tile it g times along the lane dim, cast
    # to x.dtype once here (kernel B then has zero per-tile casts).
    scale_flat = jnp.tile(scale.reshape(n, 1, hw), (1, 1, g)).astype(x.dtype)

    itemsize = jnp.dtype(x.dtype).itemsize
    tc, tl = _pick_tiles(cg, L, itemsize)
    grid = (n, pl.cdiv(L, tl), pl.cdiv(cg, tc))   # channel tiles innermost:
                                                  # scale block index unchanged
                                                  # across them -> no re-fetch.

    # ---- Kernel B: streaming elementwise modulation -------------------------
    out_flat = pl.pallas_call(
        _modulate_kernel,
        out_shape=jax.ShapeDtypeStruct((n, cg, L), x.dtype),
        grid_spec=pltpu.PrefetchScalarGridSpec(
            num_scalar_prefetch=0,
            grid=grid,
            in_specs=[
                pl.BlockSpec((pl.Squeezed(), tc, tl), lambda b, l, j: (b, j, l)),
                pl.BlockSpec((pl.Squeezed(), 1, tl), lambda b, l, j: (b, 0, l)),
            ],
            out_specs=pl.BlockSpec((pl.Squeezed(), tc, tl),
                                   lambda b, l, j: (b, j, l)),
        ),
        compiler_params=pltpu.CompilerParams(
            dimension_semantics=("parallel", "parallel", "parallel"),
            vmem_limit_bytes=_VMEM_LIMIT_BYTES,
        ),
    )(x_flat, scale_flat)

    return out_flat.reshape(n, c, h, w)


if __name__ == "__main__":
    key = jax.random.PRNGKey(0)

    # Two configs: hw=64 (exercises the channel-group lane-densify path, g=2)
    # and hw=256 (already lane-dense, g=1).
    configs = [
        dict(N=2, C=4, H=32, W=32, n_downsamples=2),
        dict(N=2, C=4, H=64, W=64, n_downsamples=2),
    ]
    degree = 0.5
    ok = True

    for cfg in configs:
        key, kx, km = jax.random.split(key, 3)
        N, C, H, W, nd = cfg["N"], cfg["C"], cfg["H"], cfg["W"], cfg["n_downsamples"]
        h, w = H // (2 ** nd), W // (2 ** nd)

        x = jax.random.normal(kx, (N, C, h, w), dtype=jnp.float32)
        mask = jax.nn.sigmoid(jax.random.normal(km, (N, 1, H, W), dtype=jnp.float32))

        out_s = modify_block(x, mask, n_downsamples=nd, mod="strengthen", degree=degree)
        out_w = modify_block(x, mask, n_downsamples=nd, mod="weaken", degree=degree)
        jax.block_until_ready((out_s, out_w))

        # reference: same separable-bilinear math in plain JAX
        ah = _interp_matrix(h, H)
        aw = _interp_matrix(w, W)
        mask_ds = jnp.einsum("oh,nchw,pw->ncop", ah, mask, aw)
        ref_s = x + x * mask_ds * degree
        ref_w = x - x * mask_ds * degree
        ok &= bool(jnp.allclose(out_s, ref_s, atol=1e-5, rtol=1e-5))
        ok &= bool(jnp.allclose(out_w, ref_w, atol=1e-5, rtol=1e-5))

    assert ok
    print("KERNEL_OK")
</pallas_src>

<mosaic_0001>
module attributes {stable_mosaic.version = 11 : i64} {
  func.func @_scale_kernel(%arg0: i32, %arg1: memref<1x1x32x32xf32, #tpu.memory_space<vmem>>, %arg2: memref<8x32xf32, #tpu.memory_space<vmem>>, %arg3: memref<32x8xf32, #tpu.memory_space<vmem>>, %arg4: memref<1x8x8xf32, #tpu.memory_space<vmem>>) attributes {dimension_semantics = [#tpu.dimension_semantics<parallel>], iteration_bounds = array<i64: 2>, scalar_prefetch = 0 : i64, scratch_operands = 0 : i64, tpu.core_type = #tpu.core_type<tc>, window_params = [{transform_indices = @transform_0, window_bounds = array<i64: 1, 1, 32, 32>}, {pipeline_mode = #tpu.pipeline_mode<synchronous>, transform_indices = @transform_1, window_bounds = array<i64: 8, 32>}, {pipeline_mode = #tpu.pipeline_mode<synchronous>, transform_indices = @transform_2, window_bounds = array<i64: 32, 8>}, {transform_indices = @transform_3, window_bounds = array<i64: 1, 8, 8>}]} {
    %c0 = arith.constant 0 : index
    %c0_0 = arith.constant 0 : index
    %c0_1 = arith.constant 0 : index
    %c0_2 = arith.constant 0 : index
    %0 = vector.load %arg1[%c0, %c0_0, %c0_1, %c0_2] : memref<1x1x32x32xf32, #tpu.memory_space<vmem>>, vector<1x1x32x32xf32>
    %1 = vector.shape_cast %0 : vector<1x1x32x32xf32> to vector<32x32xf32>
    %c0_3 = arith.constant 0 : index
    %c0_4 = arith.constant 0 : index
    %2 = vector.load %arg2[%c0_3, %c0_4] : memref<8x32xf32, #tpu.memory_space<vmem>>, vector<8x32xf32>
    %cst = arith.constant dense<0.000000e+00> : vector<8x32xf32>
    %3 = tpu.matmul %2, %1, %cst {dimension_numbers = #tpu.dot_dimension_numbers<[1], [0], [0], [1], [0, 0, 1, 1], [], []>} : vector<8x32xf32>, vector<32x32xf32>, vector<8x32xf32> -> vector<8x32xf32>
    %c0_5 = arith.constant 0 : index
    %c0_6 = arith.constant 0 : index
    %4 = vector.load %arg3[%c0_5, %c0_6] : memref<32x8xf32, #tpu.memory_space<vmem>>, vector<32x8xf32>
    %cst_7 = arith.constant dense<0.000000e+00> : vector<8x8xf32>
    %5 = tpu.matmul %3, %4, %cst_7 {dimension_numbers = #tpu.dot_dimension_numbers<[1], [0], [0], [1], [0, 0, 1, 1], [], []>} : vector<8x32xf32>, vector<32x8xf32>, vector<8x8xf32> -> vector<8x8xf32>
    %cst_8 = arith.constant 5.000000e-01 : f32
    %6 = vector.broadcast %cst_8 : f32 to vector<8x8xf32>
    %7 = arith.mulf %6, %5 : vector<8x8xf32>
    %cst_9 = arith.constant 1.000000e+00 : f32
    %8 = vector.broadcast %cst_9 : f32 to vector<8x8xf32>
    %9 = arith.addf %8, %7 : vector<8x8xf32>
    %c0_10 = arith.constant 0 : index
    %c0_11 = arith.constant 0 : index
    %c0_12 = arith.constant 0 : index
    %10 = vector.load %arg4[%c0_10, %c0_11, %c0_12] : memref<1x8x8xf32, #tpu.memory_space<vmem>>, vector<1x8x8xf32>
    %11 = vector.shape_cast %10 : vector<1x8x8xf32> to vector<8x8xf32>
    %12 = vector.shape_cast %9 : vector<8x8xf32> to vector<1x8x8xf32>
    tpu.vector_store %arg4[%c0_10, %c0_11, %c0_12], %12 {strides = array<i32>} : memref<1x8x8xf32, #tpu.memory_space<vmem>>, vector<1x8x8xf32>,
    return
  }
  func.func @transform_0(%arg0: i32) -> (i32, i32, i32, i32) {
    %c0_i32 = arith.constant 0 : i32
    %c0_i32_0 = arith.constant 0 : i32
    %c0_i32_1 = arith.constant 0 : i32
    %c0_i32_2 = arith.constant 0 : i32
    return %arg0, %c0_i32, %c0_i32_0, %c0_i32_1 : i32, i32, i32, i32
  }
  func.func @transform_1(%arg0: i32) -> (i32, i32) {
    %c0_i32 = arith.constant 0 : i32
    %c0_i32_0 = arith.constant 0 : i32
    %c0_i32_1 = arith.constant 0 : i32
    return %c0_i32, %c0_i32_0 : i32, i32
  }
  func.func @transform_2(%arg0: i32) -> (i32, i32) {
    %c0_i32 = arith.constant 0 : i32
    %c0_i32_0 = arith.constant 0 : i32
    %c0_i32_1 = arith.constant 0 : i32
    return %c0_i32, %c0_i32_0 : i32, i32
  }
  func.func @transform_3(%arg0: i32) -> (i32, i32, i32) {
    %c0_i32 = arith.constant 0 : i32
    %c0_i32_0 = arith.constant 0 : i32
    %c0_i32_1 = arith.constant 0 : i32
    return %arg0, %c0_i32, %c0_i32_0 : i32, i32, i32
  }
}

</mosaic_0001>

<bundles_post_ra>
// kernel: tpu_custom_call.1
= control target key start
LH: loop header
LB: loop body
LE: loop exit
PB: predicated region body
PF: predicated region fallthrough
CT: control target
= control target key end

     0   :  { %8 = vsyncpa [#allocation3], 0  ;;  %s845_s0 = inlined_call_operand.hbm [shape: f32[2,1,32,32], index: 0, kind: input, shape index: {}]   ;;  %s846_s1 = inlined_call_operand.vmem [shape: f32[8,32], index: 1, kind: input, shape index: {}]   ;;  %s847_s2 = inlined_call_operand.vmem [shape: f32[32,8], index: 2, kind: input, shape index: {}]   ;;  %s848_s3 = inlined_call_operand.hbm [shape: f32[2,8,8], index: 3, kind: output, shape index: {}]  }
   0x1   :  { %10 = vsyncpa [#allocation3 + $0x1], 0 }
   0x2   :  { %11 = vsyncpa [#allocation4], 0 }
   0x3   :  { %13 = vsyncpa [#allocation4 + $0x1], 0  ;;  %s669_s12 = smov 0   ;;  %s671_s13 = smov 0  }
   0x4   :  { %s673_s14 = smov 0   ;;  %s675_s15 = smov 0  }
   0x5 LB: > { %s690_s16 = sadd.s32 4294967295, %s640_s15   ;;  %s433_s17 = sadd.s32 4294967294, %s640_s15   ;;  %s640_s15 = sphi %s675_s15, %s861_s15   ;;  %s636_s14 = sphi %s673_s14, %s860_s14   ;;  %s632_s13 = sphi %s671_s13, %s859_s13   ;;  %s628_s12 = sphi %s669_s12, %s858_s12  }
   0x6   : > { %s694_s18 = sadd.s32 1, %s640_s15   ;;  %s26_s19 = sadd.s32 1, %s636_s14 }
   0x7   : > { %s23_s20 = ssub.s32 %s640_s15, %s694_s18  ;;  %p33_p0 = scmp.ne.s32.totalorder %s636_s14, %s632_s13 }
   0x8   : > { %p24_p1 = scmp.eq.s32.totalorder %s23_s20, 0  ;;  %p34_p2 = scmp.eq.s32.totalorder %s640_s15, 0 }
   0x9   : > { %p39_p3 = scmp.ne.s32.totalorder %s632_s13, %s628_s12  ;;  %p40_p4 = scmp.eq.s32.totalorder %s690_s16, 0 }
   0xa   : > { %s706_s21 = scalar_select %p24_p1, %s636_s14, %s26_s19  }
   0xb   : > { %p708_p5 = por %p34_p2, %p33_p0  ;;  %p712_p6 = por %p40_p4, %p39_p3 }
   0xc   : > { %p105_p7 = scmp.eq.s32.totalorder %s690_s16, 1  ;;  %p111_p8 = scmp.eq.s32.totalorder %s433_s17, 1 }
   0xd   : > { %p505_p10 = scmp.lt.s32.totalorder %s640_s15, 2  ;;  %s137_s26 = sand.u32 1, %s636_s14  }
   0xe   : > { %p719_p11 = por %p105_p7, %p33_p0  ;;  %p723_p12 = por %p111_p8, %p39_p3 }
   0xf   : > { %s448_s27 = sshll.u32 %s640_s15, 9  ;;  %s436_s28 = sshll.u32 %s137_s26, 5 }
  0x10   : > { %s852_s24 = scalar_select %p719_p11, 1, 0 }
  0x11   : > { %s853_s25 = scalar_select %p723_p12, 1, 0 }
  0x12   : > { %s732_s4 = scalar_lea.hbm %s845_s0, %s448_s27  ;;  %s141_s5 = scalar_lea.vmem [#allocation2], %s436_s28 }
  0x13   : > { %s148_s6 = sshll.u32 %s141_s5, 4  ;;  %p736_p13 = pnand %p505_p10, %p708_p5  ;;  %s740_s6 = int_to_ptr.vmem [resolvable:$true] %s148_s6 }
  0x14   : > { %s742_s8 = scalar_lea.sflag [#allocation3], %s137_s26  ;;  %s544_s9 = scalar_lea.hbm %s732_s4, 512 }
  0x15   : > { %p545_p0 = scmp.ne.s32.totalorder %s732_s4, %s544_s9  ;;  %p546_p1 = pneg %p736_p13 }
  0x16   : > { %s549_s17 = scalar_lea.hbm %s845_s0, 1024  ;;  %p550_p4 = scmp.lt.u32.totalorder %s732_s4, %s845_s0 }
  0x17   : > { %p547_p2 = pnand %p546_p1, %p545_p0  ;;  %p551_p5 = scmp.lt.u32.totalorder %s549_s17, %s544_s9 }
  0x18   : > { %p553_p8 = scmp.lt.u32.totalorder %s544_s9, %s732_s4 }
  0x19   : > { %p548_p3 = pneg %p547_p2  ;;  %p552_p7 = por %p551_p5, %p550_p4 }
  0x1b   : > { %p554_p10 = por %p553_p8, %p552_p7 }
  0x1d   : > { %p555_p9 = pnand %p554_p10, %p548_p3 }
  0x1f   : > { %558 = shalt.err (!%p555_p9)
}
  0x20   : > { %s559_s22 = scalar_lea.vmem %s740_s6, 512  ;;  %s642_s26 = smov [#allocation2]  }
  0x21   : > { %p560_p0 = scmp.ne.s32.totalorder %s740_s6, %s559_s22  ;;  %s564_s27 = sshll.u32 %s642_s26, 4  ;;  %s565_s27 = int_to_ptr.vmem [resolvable:$false] %s564_s27 }
  0x22   : > { %s566_s28 = scalar_lea.vmem %s565_s27, 1024  ;;  %p567_p11 = scmp.lt.s32.totalorder %s740_s6, %s565_s27 }
  0x23   : > { %p562_p2 = pnand %p560_p0, %p546_p1  ;;  %p568_p4 = scmp.lt.s32.totalorder %s566_s28, %s559_s22 }
  0x25   : > { %p563_p12 = pneg %p562_p2  ;;  %p569_p5 = por %p568_p4, %p567_p11 }
  0x27   : > { %p570_p7 = pnand %p569_p5, %p563_p12 }
  0x29   : > { %573 = shalt.err (!%p570_p7)
}
  0x2a   : > { %s643_s29 = smov 128   ;;  %s644_s30 = smov 8  }
  0x2b   : > { %500 = dma.hbm_to_vmem [thread:$0]  (!%p736_p13), %s732_s4, 512, %s740_s6, %s742_s8, %s643_s29, %s643_s29, %s644_s30  }
  0x2c   : > { %p439_p9 = scmp.ge.s32.totalorder %s640_s15, 1  ;;  %p156_p1 = scmp.lt.s32.totalorder %s640_s15, 3 }
  0x2e   : > { %p157_p3 = pnand %p439_p9, %p156_p1 }
  0x2f   : > { %s773_s5 = sand.u32 (!%p157_p3), 1, %s632_s13  }
  0x30   : > { %160 = sbr.rel (%p157_p3) target bundleno = 508 (0x1fc), region = 32  ;;  %s440_s9 = sshll.u32 (!%p157_p3), %s773_s5, 5 }
  0x31   : > { %s163_s10 = scalar_lea.sflag (!%p157_p3), [#allocation3], %s773_s5  ;;  %s166_s11 = scalar_lea.vmem (!%p157_p3), [#allocation2], %s440_s9 }
  0x37   : > { %619 = dma.done.wait (%p712_p6), %s163_s10, 512  }
  0x38   : > { %621 = vsyncadd (%p712_p6), %s163_s10, 4294966784  ;;  %v645_v0 = vmov 0.0|0.0   ;;  %vm646_vm0 = vmmov 0   ;;  %v647_v1 = vmov 0.0   ;;  %v189_v2 = vld [vmem:[%s166_s11] sm:$0xff]  ;;  %v190_v3 = vld [vmem:[%s166_s11 + $0x8] sm:$0xff] }
  0x39   : > { %481 = vmatprep.subr.bf16.mxu0 %v645_v0  ;;  %467 = vmatprep.mubr.msk.f32.mxu0 %vm646_vm0, %v647_v1  ;;  %v191_v4 = vld [vmem:[%s166_s11 + $0x10] sm:$0xff]  ;;  %v482_v5 = vpack.c.bf16 %v190_v3, %v189_v2  ;;  %v192_v6 = vld [vmem:[%s166_s11 + $0x18] sm:$0xff]  ;;  %v268_v7 = vld [vmem:[%s847_s2] sm:$0xff]  ;;  %vm194_vm1 = vcmask 261120   ;;  %s441_s27 = sshll.u32 %s773_s5, 3  ;;  %s445_s28 = sshll.u32 %s690_s16, 7 }
  0x3a   : > { %487 = vmatprep.subr.bf16.mxu1 %v645_v0  ;;  %478 = vmatprep.mubr.msk.f32.mxu1 %vm646_vm0, %v647_v1  ;;  %v269_v8 = vld [vmem:[%s847_s2 + $0x8] sm:$0xff]  ;;  %v270_v9 = vld [vmem:[%s847_s2 + $0x10] sm:$0xff]  ;;  %v271_v10 = vld [vmem:[%s847_s2 + $0x18] sm:$0xff]  ;;  %v485_v11 = vpack.c.bf16 %v192_v6, %v191_v4  ;;  %s188_s29 = scalar_lea.vmem [#allocation5], %s441_s27  ;;  %vm347_vm2 = vcmask 64512   ;;  %s801_s11 = scalar_lea.hbm %s848_s3, %s445_s28 }
  0x3b   : > { %483 = vmatpush3.bf16.msra.mxu0 %v482_v5  ;;  %v488_v12 = vpack.c.bf16 %v269_v8, %v268_v7  ;;  %v491_v13 = vpack.c.bf16 %v271_v10, %v270_v9  ;;  %v193_v14 = vld [vmem:[%s846_s1] sm:$0xff]  ;;  %s363_s30 = sshll.u32 %s188_s29, 4  ;;  %s350_s4 = scalar_lea.sflag [#allocation4], %s773_s5  ;;  %s803_s30 = int_to_ptr.vmem [resolvable:$true] %s363_s30 }
  0x3c   : > { %484 = vmatprep.subr.bf16.mxu0 %v645_v0  ;;  %s574_s6 = scalar_lea.vmem %s803_s30, 128  ;;  %p855_p11 = scmp.ne.s32.totalorder %s852_s24, 0 }
  0x3d   : > { %489 = vmatpush3.bf16.msra.mxu1 %v488_v12  ;;  %p575_p6 = scmp.ne.s32.totalorder %s803_s30, %s574_s6  ;;  %s648_s16 = smov [#allocation5]  }
  0x3e   : > { %490 = vmatprep.subr.bf16.mxu1 %v645_v0  ;;  %s578_s7 = sshll.u32 %s648_s16, 4  ;;  %s579_s7 = int_to_ptr.vmem [resolvable:$false] %s578_s7 }
  0x3f   : > { %486 = vmatpush3.bf16.msra.mxu0 %v485_v11  ;;  %p576_p12 = pnand %p575_p6, %p855_p11  ;;  %s580_s8 = scalar_lea.vmem %s579_s7, 256 }
  0x40   : > { %p581_p8 = scmp.lt.s32.totalorder %s803_s30, %s579_s7  ;;  %p582_p10 = scmp.lt.s32.totalorder %s580_s8, %s574_s6 }
  0x41   : > { %492 = vmatpush3.bf16.msra.mxu1 %v491_v13  ;;  %p577_p13 = pneg %p576_p12 }
  0x42   : > { %468 = vmatmul.mubr.msk.f32.vlgmr.msra.gmra.mrb[0].mxu0 %vm194_vm1, %v193_v14  ;;  %p583_p0 = por %p582_p10, %p581_p8 }
  0x44   : > { %p584_p2 = pnand %p583_p0, %p577_p13 }
 0x115   : > { %v264_v15 = vpop.f32.mrb[0].mxu0 }
 0x116   : > { %v469_v16 = vpop.f32.mrb[1].mxu0  ;;  %479 = vmatmul.mubr.msk.f32.vlgmr.msra.gmra.mrb[0].mxu1 %vm194_vm1, %v264_v15 }
 0x1e9   : > { %v341_v17 = vpop.f32.mrb[0].mxu1 }
 0x1ea   : > { %v345_v18 = vmul.f32 0.5, %v341_v17  ;;  %v480_v19 = vpop.f32.mrb[1].mxu1 }
 0x1ec   : > { %v346_v20 = vadd.f32 1.0, %v345_v18 }
 0x1ee   : > { %348 = vst.msk [vmem:[%s188_s29] sm:$0xff] %vm347_vm2, %v346_v20 }
 0x1ef   : > { %587 = shalt.err (!%p584_p2)
}
 0x1f0   : > { %s588_s5 = scalar_lea.hbm %s801_s11, 128  ;;  %s592_s19 = scalar_lea.hbm %s848_s3, 256 }
 0x1f1   : > { %p589_p4 = scmp.ne.s32.totalorder %s801_s11, %s588_s5  ;;  %p593_p9 = scmp.lt.u32.totalorder %s801_s11, %s848_s3 }
 0x1f2   : > { %p594_p1 = scmp.lt.u32.totalorder %s592_s19, %s588_s5  ;;  %p596_p6 = scmp.lt.u32.totalorder %s588_s5, %s801_s11 }
 0x1f3   : > { %p590_p5 = pnand %p589_p4, %p855_p11 }
 0x1f4   : > { %p595_p3 = por %p594_p1, %p593_p9 }
 0x1f5   : > { %p591_p7 = pneg %p590_p5 }
 0x1f6   : > { %p597_p12 = por %p596_p6, %p595_p3 }
 0x1f8   : > { %p598_p13 = pnand %p597_p12, %p591_p7 }
 0x1fa   : > { %601 = shalt.err (!%p598_p13)
}
 0x1fb   : > { %495 = dma.vmem_to_hbm [thread:$0]  (%p855_p11), %s803_s30, 128, %s801_s11, %s350_s4  }
 0x1fc PF: > { %s375_s26 = sand.u32 1, %s628_s12   ;;  %p856_p8 = scmp.ne.s32.totalorder %s853_s25, 0 }
 0x1fd   : > { %p857_p10 = scmp.ge.s32.totalorder %s640_s15, 2  ;;  %s376_s27 = scalar_lea.sflag [#allocation4], %s375_s26 }
 0x1ff   : > { %p502_p0 = pnand %p857_p10, %p856_p8 }
 0x201   : > { %623 = dma.done.wait (!%p502_p0), %s376_s27, 128  }
 0x202   : > { %625 = vsyncadd (!%p502_p0), %s376_s27, 4294967168  ;;  %p16_p2 = scmp.ge.s32.totalorder %s694_s18, 4   ;;  %s858_s12 = smov %s632_s13 }
 0x203   : > { %s859_s13 = smov %s636_s14  ;;  %s860_s14 = smov %s706_s21 }
 0x204   : > { %s861_s15 = smov %s694_s18  ;;  %18 = sbr.rel (!%p16_p2) target bundleno = 5 (0x5), region = 77 }
 0x20b   :  { %381 = vsyncpa [#allocation3], 1 }
 0x20c   :  { %383 = vsyncpa [#allocation3 + $0x1], 1 }
 0x20d   :  { %384 = vsyncpa [#allocation4], 1 }
 0x20e   :  { %386 = vsyncpa [#allocation4 + $0x1], 1 }

</bundles_post_ra>
